<compile_context>
chip_gen: v6e
topology: v6e:2x2x1
jax: 0.10.0
libtpu: 0.0.40
codegen_flags: <defaults>
</compile_context>

<pallas_src>
import functools

import jax
import jax.numpy as jnp
from jax.experimental import pallas as pl
from jax.experimental.pallas import tpu as pltpu


def _round_up(x: int, m: int) -> int:
  return (x + m - 1) // m * m


# ---------------------------------------------------------------------------
# Kernels
# ---------------------------------------------------------------------------
def _head_kernel(x_ref, w_ref, b_ref, logits_ref, values_ref, *, num_actions):
  """One M tile, full input_size resident: fused actor+critic matmul."""
  out = jnp.dot(x_ref[...], w_ref[...],
                preferred_element_type=jnp.float32) + b_ref[...]
  logits_ref[...] = out[:, :num_actions].astype(logits_ref.dtype)
  values_ref[...] = out[:, num_actions:num_actions + 1].astype(values_ref.dtype)


def _head_kernel_ktiled(x_ref, w_ref, b_ref, logits_ref, values_ref, acc_ref,
                        *, num_actions):
  """K-tiled variant (very large input_size): f32 accumulator across K tiles."""
  k = pl.program_id(1)

  @pl.when(k == 0)
  def _():
    acc_ref[...] = jnp.zeros_like(acc_ref)

  acc_ref[...] += jnp.dot(x_ref[...], w_ref[...],
                          preferred_element_type=jnp.float32)

  @pl.when(k == pl.num_programs(1) - 1)
  def _():
    out = acc_ref[...] + b_ref[...]
    logits_ref[...] = out[:, :num_actions].astype(logits_ref.dtype)
    values_ref[...] = out[:, num_actions:num_actions + 1].astype(values_ref.dtype)


# ---------------------------------------------------------------------------
# One-time parameter layout plumbing (keep OUT of the per-step forward call).
# ---------------------------------------------------------------------------
def prepare_head_params(weight, bias, *, mxu_dtype=jnp.bfloat16):
  """(1+A, D) torch nn.Linear layout -> (D, Np) MXU layout + (1, Np) f32 bias."""
  n, d = weight.shape
  n_pad = _round_up(n, 128)
  w = jnp.zeros((d, n_pad), mxu_dtype).at[:, :n].set(weight.T.astype(mxu_dtype))
  b = jnp.zeros((1, n_pad), jnp.float32).at[:, :n].set(bias.astype(jnp.float32))
  return w, b


# ---------------------------------------------------------------------------
# Forward pass
# ---------------------------------------------------------------------------
@functools.partial(jax.jit, static_argnames=("num_actions",))
def linear_actor_critic_head(x, w_prep, b_prep, *, num_actions):
  """LinearActorCriticHead forward.

  x      : [..., input_size]; bf16 is the intended fast path (cast x upstream,
           fused with its producer — this wrapper never casts x).
  w_prep : [input_size, Np]  from prepare_head_params (pre-transposed / padded)
  b_prep : [1, Np] float32   from prepare_head_params
  returns (logits [..., num_actions] f32, values [..., 1] f32)
  """
  *lead, D = x.shape
  A = num_actions
  Np = b_prep.shape[-1]
  M = 1
  for s in lead:
    M *= s
  x2 = x.reshape(M, D)

  x_bytes = jnp.dtype(x2.dtype).itemsize
  w_bytes = jnp.dtype(w_prep.dtype).itemsize
  sub = 16 if x_bytes == 2 else 8          # bf16 packs 16 sublanes per vreg

  # --- K (input_size) tiling: only needed for very large D ------------------
  TK, nk = D, 1
  if D > 8192:
    for cand in (4096, 2048, 1024, 512):
      if D % cand == 0:
        TK, nk = cand, D // cand
        break

  # --- M tiling --------------------------------------------------------------
  # Big tiles amortize per-grid-step overhead, but:
  #   (a) keep >= 2 M tiles whenever possible so both v7x TensorCores work,
  #   (b) stay inside a conservative VMEM budget valid on v5e/v6e/v7x.
  TM = min(2048, _round_up(M, sub))
  if M >= 2 * sub:
    TM = min(TM, _round_up(pl.cdiv(M, 2), sub))

  def _vmem_need(tm):
    need = 2 * tm * TK * x_bytes                        # double-buffered x tile
    need += (1 if nk == 1 else 2) * TK * Np * w_bytes   # weight block(s)
    need += Np * 4                                      # bias
    need += 2 * tm * (A + 1) * 4                        # double-buffered outputs
    if nk > 1:
      need += tm * Np * 4                               # f32 accumulator scratch
    return need

  vmem_budget = 40 * 1024 * 1024          # fits v7x's 64 MiB physical VMEM
  while TM > sub and _vmem_need(TM) > vmem_budget:
    TM = max(sub, _round_up(TM // 2, sub))

  nm = pl.cdiv(M, TM)                     # ragged last M tile handled by Pallas

  if nk == 1:
    kernel = functools.partial(_head_kernel, num_actions=A)
    scratch_shapes = ()
  else:
    kernel = functools.partial(_head_kernel_ktiled, num_actions=A)
    scratch_shapes = (pltpu.VMEM((TM, Np), jnp.float32),)

  cost = pl.CostEstimate(
      flops=2 * M * D * Np,
      transcendentals=0,
      bytes_accessed=M * D * x_bytes + D * Np * w_bytes + M * (A + 1) * 4,
  )

  logits, values = pl.pallas_call(
      kernel,
      out_shape=(jax.ShapeDtypeStruct((M, A), jnp.float32),
                 jax.ShapeDtypeStruct((M, 1), jnp.float32)),
      grid_spec=pltpu.PrefetchScalarGridSpec(
          num_scalar_prefetch=0,
          grid=(nm, nk),
          in_specs=[
              pl.BlockSpec((TM, TK), lambda i, k: (i, k)),   # activations tile
              pl.BlockSpec((TK, Np), lambda i, k: (k, 0)),   # fused weight
              pl.BlockSpec((1, Np), lambda i, k: (0, 0)),    # fused bias
              # TODO(synk): on v7x, pipeline_mode=pl.Buffered(1) on the two
              # grid-invariant blocks above would halve their VMEM footprint.
          ],
          out_specs=(
              pl.BlockSpec((TM, A), lambda i, k: (i, 0)),    # actor logits
              pl.BlockSpec((TM, 1), lambda i, k: (i, 0)),    # critic value
          ),
          scratch_shapes=scratch_shapes,
      ),
      compiler_params=pltpu.CompilerParams(
          dimension_semantics=("parallel", "arbitrary"),
          vmem_limit_bytes=min(max(_vmem_need(TM) + (4 << 20), 16 << 20),
                               64 << 20),
      ),
      cost_estimate=cost,
  )(x2, w_prep, b_prep)

  logits = logits.reshape(tuple(lead) + (A,))
  values = values.reshape(tuple(lead) + (1,))
  return logits, values


def reference_forward(x, weight, bias):
  out = jnp.einsum("...d,nd->...n", x.astype(jnp.float32),
                   weight.astype(jnp.float32),
                   precision=jax.lax.Precision.HIGHEST) + bias
  return out[..., :-1], out[..., -1:]


if __name__ == "__main__":
  steps, samplers, input_size, num_actions = 8, 4, 32, 8

  key = jax.random.PRNGKey(0)
  kx, kw, kb = jax.random.split(key, 3)

  x = jax.random.normal(kx, (steps, samplers, input_size), jnp.float32)

  # Mirror the module init: orthogonal fused weight, zero bias.
  g = jax.random.normal(kw, (input_size, 1 + num_actions), jnp.float32)
  q, _ = jnp.linalg.qr(g)                   # orthonormal columns
  weight = q.T                              # (1 + A, D) with orthonormal rows
  bias = jnp.zeros((1 + num_actions,), jnp.float32)

  # Tolerance note: the MXU may evaluate f32 matmuls with bf16 passes and the
  # bf16 fast path rounds its inputs; 5e-2 absolute slack covers both while
  # still catching any real slicing / bias / layout bug (those are O(1) errors).
  TOL = 5e-2

  ref_logits, ref_values = reference_forward(x, weight, bias)

  # --- f32 MXU path ----------------------------------------------------------
  w32, b32 = prepare_head_params(weight, bias, mxu_dtype=jnp.float32)
  logits, values = linear_actor_critic_head(x, w32, b32,
                                            num_actions=num_actions)
  jax.block_until_ready((logits, values))
  assert logits.shape == (steps, samplers, num_actions)
  assert values.shape == (steps, samplers, 1)
  assert jnp.allclose(logits, ref_logits, atol=TOL)
  assert jnp.allclose(values, ref_values, atol=TOL)

  # --- bf16 fast path (x cast upstream; f32 MXU accumulation) ---------------
  x_bf16 = x.astype(jnp.bfloat16)           # in real use: fused into x's producer
  wbf, bbf = prepare_head_params(weight, bias)                 # bf16 default
  logits_bf, values_bf = linear_actor_critic_head(
      x_bf16, wbf, bbf, num_actions=num_actions)
  jax.block_until_ready((logits_bf, values_bf))
  # Expected bf16 input-rounding vs the f32 PyTorch module (documented).
  assert jnp.allclose(logits_bf, ref_logits, atol=TOL)
  assert jnp.allclose(values_bf, ref_values, atol=TOL)

  # --- non-zero bias sanity check (exercise the bias add) --------------------
  bias2 = 0.1 * jax.random.normal(kb, (1 + num_actions,), jnp.float32)
  w2, b2 = prepare_head_params(weight, bias2, mxu_dtype=jnp.float32)
  l2, v2 = linear_actor_critic_head(x, w2, b2, num_actions=num_actions)
  jax.block_until_ready((l2, v2))
  r2l, r2v = reference_forward(x, weight, bias2)
  assert jnp.allclose(l2, r2l, atol=TOL)
  assert jnp.allclose(v2, r2v, atol=TOL)

  print("KERNEL_OK")
</pallas_src>

<mosaic_0001>
module attributes {stable_mosaic.version = 11 : i64} {
  func.func @_head_kernel(%arg0: i32, %arg1: i32, %arg2: memref<16x32xf32, #tpu.memory_space<vmem>>, %arg3: memref<32x128xf32, #tpu.memory_space<vmem>>, %arg4: memref<1x128xf32, #tpu.memory_space<vmem>>, %arg5: memref<16x8xf32, #tpu.memory_space<vmem>>, %arg6: memref<16x1xf32, #tpu.memory_space<vmem>>) attributes {dimension_semantics = [#tpu.dimension_semantics<parallel>, #tpu.dimension_semantics<arbitrary>], iteration_bounds = array<i64: 2, 1>, scalar_prefetch = 0 : i64, scratch_operands = 0 : i64, tpu.core_type = #tpu.core_type<tc>, window_params = [{transform_indices = @transform_0, window_bounds = array<i64: 16, 32>}, {transform_indices = @transform_1, window_bounds = array<i64: 32, 128>}, {pipeline_mode = #tpu.pipeline_mode<synchronous>, transform_indices = @transform_2, window_bounds = array<i64: 1, 128>}, {transform_indices = @transform_3, window_bounds = array<i64: 16, 8>}, {transform_indices = @transform_4, window_bounds = array<i64: 16, 1>}]} {
    %c0 = arith.constant 0 : index
    %c0_0 = arith.constant 0 : index
    %0 = vector.load %arg2[%c0, %c0_0] : memref<16x32xf32, #tpu.memory_space<vmem>>, vector<16x32xf32>
    %c0_1 = arith.constant 0 : index
    %c0_2 = arith.constant 0 : index
    %1 = vector.load %arg3[%c0_1, %c0_2] : memref<32x128xf32, #tpu.memory_space<vmem>>, vector<32x128xf32>
    %cst = arith.constant dense<0.000000e+00> : vector<16x128xf32>
    %2 = tpu.matmul %0, %1, %cst {dimension_numbers = #tpu.dot_dimension_numbers<[1], [0], [0], [1], [0, 0, 1, 1], [], []>} : vector<16x32xf32>, vector<32x128xf32>, vector<16x128xf32> -> vector<16x128xf32>
    %c0_3 = arith.constant 0 : index
    %c0_4 = arith.constant 0 : index
    %3 = vector.load %arg4[%c0_3, %c0_4] : memref<1x128xf32, #tpu.memory_space<vmem>>, vector<1x128xf32>
    %4 = vector.broadcast %3 : vector<1x128xf32> to vector<16x128xf32>
    %5 = arith.addf %2, %4 : vector<16x128xf32>
    %6 = vector.extract_strided_slice %5 {offsets = [0, 0], sizes = [16, 8], strides = [1, 1]} : vector<16x128xf32> to vector<16x8xf32>
    %c0_5 = arith.constant 0 : index
    %c0_6 = arith.constant 0 : index
    %7 = vector.load %arg5[%c0_5, %c0_6] : memref<16x8xf32, #tpu.memory_space<vmem>>, vector<16x8xf32>
    tpu.vector_store %arg5[%c0_5, %c0_6], %6 {strides = array<i32>} : memref<16x8xf32, #tpu.memory_space<vmem>>, vector<16x8xf32>,
    %8 = vector.extract_strided_slice %5 {offsets = [0, 8], sizes = [16, 1], strides = [1, 1]} : vector<16x128xf32> to vector<16x1xf32>
    %c0_7 = arith.constant 0 : index
    %c0_8 = arith.constant 0 : index
    %9 = vector.load %arg6[%c0_7, %c0_8] : memref<16x1xf32, #tpu.memory_space<vmem>>, vector<16x1xf32>
    tpu.vector_store %arg6[%c0_7, %c0_8], %8 {strides = array<i32>} : memref<16x1xf32, #tpu.memory_space<vmem>>, vector<16x1xf32>,
    return
  }
  func.func @transform_0(%arg0: i32, %arg1: i32) -> (i32, i32) {
    %c0_i32 = arith.constant 0 : i32
    return %arg0, %arg1 : i32, i32
  }
  func.func @transform_1(%arg0: i32, %arg1: i32) -> (i32, i32) {
    %c0_i32 = arith.constant 0 : i32
    %c0_i32_0 = arith.constant 0 : i32
    return %arg1, %c0_i32 : i32, i32
  }
  func.func @transform_2(%arg0: i32, %arg1: i32) -> (i32, i32) {
    %c0_i32 = arith.constant 0 : i32
    %c0_i32_0 = arith.constant 0 : i32
    %c0_i32_1 = arith.constant 0 : i32
    return %c0_i32, %c0_i32_0 : i32, i32
  }
  func.func @transform_3(%arg0: i32, %arg1: i32) -> (i32, i32) {
    %c0_i32 = arith.constant 0 : i32
    %c0_i32_0 = arith.constant 0 : i32
    return %arg0, %c0_i32 : i32, i32
  }
  func.func @transform_4(%arg0: i32, %arg1: i32) -> (i32, i32) {
    %c0_i32 = arith.constant 0 : i32
    %c0_i32_0 = arith.constant 0 : i32
    return %arg0, %c0_i32 : i32, i32
  }
}

</mosaic_0001>

<bundles_post_ra>
// kernel: linear_actor_critic_head.1
= control target key start
LH: loop header
LB: loop body
LE: loop exit
PB: predicated region body
PF: predicated region fallthrough
CT: control target
= control target key end

     0   :  { %s1013_s0 = inlined_call_operand.hbm [shape: f32[32,32], index: 0, kind: input, shape index: {}]   ;;  %s1014_s1 = inlined_call_operand.hbm [shape: f32[32,128], index: 1, kind: input, shape index: {}]   ;;  %s1015_s2 = inlined_call_operand.vmem [shape: f32[1,128], index: 2, kind: input, shape index: {}]   ;;  %s1016_s3 = inlined_call_operand.hbm [shape: f32[32,8], index: 3, kind: output, shape index: {0}]   ;;  %s1017_s4 = inlined_call_operand.vmem [shape: f32[32,1], index: 4, kind: output, shape index: {1}]  }
   0x1   :  { %1021 = sst [smem:[#allocation11_spill]] %s1014_s1 }
   0x2   :  { %10 = vsyncpa [#allocation3], 0 }
   0x3   :  { %12 = vsyncpa [#allocation3 + $0x1], 0 }
   0x4   :  { %13 = vsyncpa [#allocation6], 0 }
   0x5   :  { %14 = vsyncpa [#allocation4], 0 }
   0x6   :  { %16 = vsyncpa [#allocation4 + $0x1], 0  ;;  %s815_s15 = smov 0   ;;  %s817_s16 = smov 0  }
   0x7   :  { %s819_s17 = smov 0   ;;  %s821_s18 = smov 0  }
   0x8   :  { %s823_s19 = smov 0   ;;  %s825_s20 = smov 0  }
   0x9 LB: > { %s523_s21 = sadd.s32 4294967295, %s780_s20   ;;  %s524_s22 = sadd.s32 4294967294, %s780_s20   ;;  %s780_s20 = sphi %s825_s20, %s22_s20   ;;  %s776_s19 = sphi %s823_s19, %s1041_s19   ;;  %s772_s18 = sphi %s821_s18, %s1040_s18   ;;  %s768_s17 = sphi %s819_s17, %s1039_s17   ;;  %s764_s16 = sphi %s817_s16, %s1038_s16   ;;  %s760_s15 = sphi %s815_s15, %s1037_s15  }
   0xa   : > { %p56_p0 = scmp.ne.s32.totalorder %s764_s16, %s760_s15  ;;  %p849_p1 = scmp.eq.s32.totalorder %s523_s21, 0 }
   0xb   : > { %p853_p2 = scmp.eq.s32.totalorder %s523_s21, 1  ;;  %p133_p3 = scmp.eq.s32.totalorder %s524_s22, 1 }
   0xc   : > { %p859_p4 = por %p849_p1, %p56_p0  ;;  %p525_p5 = scmp.ge.s32.totalorder %s780_s20, 1 }
   0xd   : > { %p864_p6 = por %p133_p3, %p56_p0  ;;  %p166_p7 = scmp.lt.s32.totalorder %s780_s20, 3 }
   0xe   : > { %s1024_s25 = scalar_select %p859_p4, 1, 0 }
   0xf   : > { %s1025_s26 = scalar_select %p864_p6, 1, 0 }
  0x10   : > { %p869_p8 = pnand %p525_p5, %p166_p7  ;;  %s782_s28 = smov [#allocation5]  }
  0x11   : > { %s181_s29 = sshll.u32 %s782_s28, 4  ;;  %s34_s5 = sadd.s32 1, %s776_s19  ;;  %s182_s29 = int_to_ptr.vmem [resolvable:$true] %s181_s29 }
  0x12   : > { %p572_p9 = pneg %p869_p8  ;;  %s653_s6 = scalar_lea.vmem %s182_s29, 512 }
  0x13   : > { %p654_p13 = scmp.ne.s32.totalorder %s182_s29, %s653_s6  ;;  %p661_p5 = scmp.lt.s32.totalorder %s182_s29, %s182_s29 }
  0x14   : > { %p878_p11 = pnand %p572_p9, %p849_p1  ;;  %p662_p7 = scmp.lt.s32.totalorder %s653_s6, %s653_s6 }
  0x16   : > { %p644_p12 = pneg %p878_p11  ;;  %p663_p6 = por %p662_p7, %p661_p5 }
  0x18   : > { %p656_p0 = pnand %p654_p13, %p644_p12 }
  0x1a   : > { %p657_p3 = pneg %p656_p0 }
  0x1c   : > { %p664_p4 = pnand %p663_p6, %p657_p3 }
  0x1e   : > { %667 = shalt.err (!%p664_p4)
}
  0x1f   : > { %s1019_s7 = smov 128   ;;  %s1020_s8 = smov 8  }
  0x20   : > { %s1028_s1 = sld [smem:[#allocation11_spill]]  ;;  %p36_p4 = scmp.ge.s32.totalorder %s34_s5, 2 }
  0x21   : > { %s43_s11 = sadd.s32 1, %s768_s17  ;;  %p50_p6 = scmp.ne.s32.totalorder %s768_s17, %s764_s16 }
  0x22   : > { %p51_p9 = scmp.eq.s32.totalorder %s780_s20, 0  ;;  %s1043_s5 = smov (%p36_p4, %s34_s5), 0 }
  0x23   : > { %p905_p13 = por %p853_p2, %p50_p6  ;;  %s38_s14 = ssub.s32 %s776_s19, %s1043_s5 }
  0x24   : > { %p899_p12 = por %p51_p9, %p50_p6  ;;  %p585_p0 = scmp.lt.s32.totalorder %s780_s20, 2 }
  0x25   : > { %s198_s21 = sand.u32 1, %s768_s17  }
  0x26   : > { %575 = dma.hbm_to_vmem [thread:$0]  (!%p878_p11), %s1028_s1, 512, %s182_s29, [#allocation6], %s1019_s7, %s1019_s7, %s1020_s8  }
  0x27   : > { %p41_p11 = scmp.eq.s32.totalorder %s38_s14, 0  ;;  %s528_s22 = sshll.u32 %s198_s21, 4 }
  0x28   : > { %s545_s29 = sshll.u32 %s776_s19, 8  ;;  %s202_s10 = scalar_lea.vmem [#allocation2], %s528_s22 }
  0x29   : > { %s914_s28 = scalar_select %p41_p11, %s768_s17, %s43_s11  }
  0x2a   : > { %s209_s9 = scalar_lea.hbm %s1013_s0, %s545_s29  ;;  %s210_s7 = sshll.u32 %s202_s10, 4  ;;  %s211_s7 = int_to_ptr.vmem [resolvable:$true] %s210_s7 }
  0x2b   : > { %p922_p2 = pnand %p585_p0, %p899_p12  ;;  %s199_s8 = scalar_lea.sflag [#allocation3], %s198_s21 }
  0x2c   : > { %s681_s14 = scalar_lea.vmem %s211_s7, 256  ;;  %s785_s11 = smov [#allocation2]  }
  0x2d   : > { %p670_p3 = pneg %p922_p2  ;;  %p682_p5 = scmp.ne.s32.totalorder %s211_s7, %s681_s14 }
  0x2e   : > { %s686_s1 = sshll.u32 %s785_s11, 4  ;;  %s687_s1 = int_to_ptr.vmem [resolvable:$false] %s686_s1 }
  0x2f   : > { %p684_p7 = pnand %p682_p5, %p670_p3  ;;  %s688_s29 = scalar_lea.vmem %s687_s1, 512 }
  0x30   : > { %p689_p6 = scmp.lt.s32.totalorder %s211_s7, %s687_s1  ;;  %p690_p9 = scmp.lt.s32.totalorder %s688_s29, %s681_s14 }
  0x31   : > { %p685_p4 = pneg %p684_p7 }
  0x32   : > { %p691_p11 = por %p690_p9, %p689_p6 }
  0x34   : > { %p692_p10 = pnand %p691_p11, %p685_p4 }
  0x36   : > { %695 = shalt.err (!%p692_p10)
}
  0x37   : > { %s1032_s12 = smov 8   ;;  %s1033_s22 = smov 128  }
  0x38   : > { %579 = dma.hbm_to_vmem [thread:$0]  (!%p922_p2), %s209_s9, 256, %s211_s7, %s199_s8, %s1033_s22, %s1033_s22, %s1032_s12  }
  0x39   : > { %222 = sbr.rel (%p869_p8) target bundleno = 399 (0x18f), region = 32  ;;  %s936_s21 = sand.u32 (!%p869_p8), 1, %s764_s16  }
  0x3a   : > { %s532_s1 = sshll.u32 (!%p869_p8), %s936_s21, 4  ;;  %s225_s30 = scalar_lea.sflag (!%p869_p8), [#allocation3], %s936_s21 }
  0x3b   : > { %s228_s6 = scalar_lea.vmem (!%p869_p8), [#allocation2], %s532_s1  ;;  %p1034_p12 = scmp.ne.s32.totalorder (!%p869_p8), %s1024_s25, 0 }
  0x3e   : > { %747 = dma.done.wait (%p1034_p12), %s225_s30, 256  }
  0x3f   : > { %749 = vsyncadd (%p1034_p12), %s225_s30, 4294967040 }
  0x40   : > { %751 = dma.done.wait (%p849_p1), [#allocation6], 512  }
  0x41   : > { %753 = vsyncadd (%p849_p1), [#allocation6], 4294966784  ;;  %vm284_vm0 = vcmask 261120   ;;  %v276_v0 = vld [vmem:[#allocation5 + $0x18] sm:$0xff]  ;;  %v275_v1 = vld [vmem:[#allocation5 + $0x10] sm:$0xff]  ;;  %s254_s27 = scalar_lea.vmem [#allocation7], %s532_s1 }
  0x42   : > { %553 = vmatprep.subr.mxu0 %v276_v0  ;;  %v271_v2 = vld [vmem:[%s228_s6] sm:$0xff]  ;;  %v274_v3 = vld [vmem:[#allocation5 + $0x8] sm:$0xff]  ;;  %s399_s7 = sshll.u32 %s254_s27, 4  ;;  %s546_s8 = sshll.u32 %s772_s18, 8  ;;  %vm366_vm1 = vcmask 64512   ;;  %s954_s7 = int_to_ptr.vmem [resolvable:$true] %s399_s7 }
  0x43   : > { %554 = vmatpush3.msra.mxu0 %v276_v0  ;;  %561 = vmatprep.mubr.msk.f32.mxu0 %vm284_vm0, %v271_v2  ;;  %v273_v4 = vld [vmem:[#allocation5] sm:$0xff]  ;;  %v272_v5 = vld [vmem:[%s228_s6 + $0x8] sm:$0xff]  ;;  %s959_s24 = scalar_lea.hbm %s1016_s3, %s546_s8  ;;  %s786_s14 = smov 120  }
  0x44   : > { %555 = vmatprep.subr.mxu0 %v275_v1  ;;  %v537_v6 = vld [vmem:[%s1015_s2] ss:$0 sm:$0xff]  ;;  %s381_s11 = scalar_lea.sflag [#allocation4], %s936_s21  ;;  %s696_s29 = scalar_lea.vmem %s954_s7, 256 }
  0x45   : > { %556 = vmatpush3.msra.mxu0 %v275_v1  ;;  %p697_p1 = scmp.ne.s32.totalorder %s954_s7, %s696_s29  ;;  %s787_s12 = smov [#allocation7]  }
  0x46   : > { %557 = vmatprep.subr.mxu0 %v274_v3  ;;  %s700_s22 = sshll.u32 %s787_s12, 4  ;;  %s701_s22 = int_to_ptr.vmem [resolvable:$false] %s700_s22 }
  0x47   : > { %558 = vmatpush3.msra.mxu0 %v274_v3  ;;  %p698_p8 = pnand %p697_p1, %p905_p13  ;;  %s702_s1 = scalar_lea.vmem %s701_s22, 512 }
  0x48   : > { %559 = vmatprep.subr.mxu0 %v273_v4  ;;  %p703_p0 = scmp.lt.s32.totalorder %s954_s7, %s701_s22  ;;  %p704_p2 = scmp.lt.s32.totalorder %s702_s1, %s696_s29 }
  0x49   : > { %560 = vmatpush3.msra.mxu0 %v273_v4  ;;  %p699_p10 = pneg %p698_p8 }
  0x4a   : > { %562 = vmatmul.mubr.msk.f32.vlgmr.msra.gmra.mxu0 %vm284_vm0, %v272_v5  ;;  %p705_p3 = por %p704_p2, %p703_p0 }
  0x4c   : > { %p706_p5 = pnand %p705_p3, %p699_p10 }
 0x10a   : > { %v563_v7 = vpop.f32.mrf.mxu0 }
 0x10b   : > { %v363_v8 = vadd.f32 %v563_v7, %v537_v6 }
 0x10c   : > { %v357_v9 = vpop.f32.mrf.mxu0 }
 0x10d   : > { %368 = vst.msk [vmem:[%s254_s27 + $0x8] sm:$0xff] %vm366_vm1, %v363_v8  ;;  %v358_v10 = vadd.f32 %v537_v6, %v357_v9 }
 0x10f   : > { %367 = vst.msk [vmem:[%s254_s27] sm:$0xff] %vm366_vm1, %v358_v10  ;;  %371 = vrot.lane.b32.xlu0 %v358_v10, %s786_s14 }
 0x110   : > { %709 = shalt.err (!%p706_p5)
}
 0x111   : > { %s710_s30 = scalar_lea.hbm %s959_s24, 256  ;;  %s714_s25 = scalar_lea.hbm %s1016_s3, 512 }
 0x112   : > { %p711_p7 = scmp.ne.s32.totalorder %s959_s24, %s710_s30  ;;  %p715_p9 = scmp.lt.s32.totalorder %s959_s24, %s1016_s3 }
 0x113   : > { %p716_p11 = scmp.lt.s32.totalorder %s714_s25, %s710_s30 }
 0x114   : > { %p712_p4 = pnand %p711_p7, %p905_p13 }
 0x115   : > { %p717_p12 = por %p716_p11, %p715_p9 }
 0x116   : > { %p713_p6 = pneg %p712_p4 }
 0x118   : > { %p718_p1 = pnand %p717_p12, %p713_p6 }
 0x11a   : > { %721 = shalt.err (!%p718_p1)
}
 0x11b   : > { %s788_s9 = smov 128   ;;  %s789_s10 = smov 8   ;;  %373 = vrot.lane.b32.xlu0 %v363_v8, %s786_s14  ;;  %vm377_vm2 = vcmask 7168  }
 0x11c   : > { %570 = dma.vmem_to_hbm [thread:$0]  (%p905_p13), %s954_s7, 256, %s959_s24, %s381_s11, %s788_s9, %s788_s9, %s789_s10  }
 0x11d   : > { %s535_s29 = sshll.u32 %s772_s18, 1 }
 0x11e   : > { %p266_p8 = scmp.lt.s32.totalorder %s535_s29, 3 }
 0x120   : > { %s1045_s29 = smov (!%p266_p8, %s535_s29), 3 }
 0x121   : > { %s536_s12 = sshll.u32 %s1045_s29, 3 }
 0x122   : > { %s269_s30 = scalar_lea.vmem %s1017_s4, %s536_s12 }
 0x181   : > { %v372_v11 = vpop.permute.xlu0 %371 }
 0x182   : > { %378 = vst.msk [vmem:[%s269_s30] sm:$0xff] %vm377_vm2, %v372_v11 }
 0x18d   : > { %v374_v12 = vpop.permute.xlu0 %373 }
 0x18e   : > { %379 = vst.msk [vmem:[%s269_s30 + $0x8] sm:$0xff] %vm377_vm2, %v374_v12 }
 0x18f PF: > { %s418_s13 = sand.u32 1, %s760_s15   ;;  %p1035_p13 = scmp.ne.s32.totalorder %s1025_s26, 0 }
 0x190   : > { %p1036_p10 = scmp.ge.s32.totalorder %s780_s20, 2  ;;  %s419_s18 = scalar_lea.sflag [#allocation4], %s418_s13 }
 0x192   : > { %p581_p0 = pnand %p1036_p10, %p1035_p13 }
 0x194   : > { %p582_p2 = pneg %p581_p0 }
 0x196   : > { %755 = dma.done.wait (%p582_p2), %s419_s18, 256  }
 0x197   : > { %757 = vsyncadd (%p582_p2), %s419_s18, 4294967040  ;;  %s22_s20 = sadd.s32 1, %s780_s20   ;;  %s1037_s15 = smov %s764_s16 }
 0x198   : > { %p19_p3 = scmp.ge.s32.totalorder %s22_s20, 4   ;;  %s1038_s16 = smov %s768_s17 }
 0x199   : > { %s1039_s17 = smov %s914_s28  ;;  %s1040_s18 = smov %s776_s19 }
 0x19a   : > { %s1041_s19 = smov %s1043_s5  ;;  %21 = sbr.rel (!%p19_p3) target bundleno = 9 (0x9), region = 94 }
 0x19f   :  { %432 = vsyncpa [#allocation3], 1 }
 0x1a0   :  { %434 = vsyncpa [#allocation3 + $0x1], 1 }
 0x1a1   :  { %435 = vsyncpa [#allocation6], 1 }
 0x1a2   :  { %436 = vsyncpa [#allocation4], 1 }
 0x1a3   :  { %438 = vsyncpa [#allocation4 + $0x1], 1 }

</bundles_post_ra>
